<compile_context>
chip_gen: v6e
topology: v6e:2x2x1
jax: 0.10.0
libtpu: 0.0.40
codegen_flags: <defaults>
</compile_context>

<pallas_src>
import functools

import jax
import jax.numpy as jnp
from jax import lax
from jax.experimental import pallas as pl
from jax.experimental.pallas import tpu as pltpu


def _causal_conv1d_kernel(x_ref, w_ref, b_ref, o_ref, carry_ref, *,
                          tl, pad, dilation, ksize, im2col, compute_dtype):
    # x_ref:     [C_in, TL]        current sequence tile (batch squeezed)
    # w_ref:     [C_out, K*C_in]   (im2col) or [K, C_out, C_in] (per-tap chain)
    # b_ref:     [C_out, 1]
    # o_ref:     [C_out, TL]
    # carry_ref: [C_in, max(pad,1)] left halo carried from the previous tile
    it = pl.program_id(1)

    if pad > 0:
        @pl.when(it == 0)
        def _():  # first tile of a batch: the causal halo is zeros
            carry_ref[...] = jnp.zeros_like(carry_ref)

        window = jnp.concatenate([carry_ref[...], x_ref[...]], axis=1)  # [C_in, pad+TL]
    else:
        window = x_ref[...]

    if compute_dtype is not None:
        window = window.astype(compute_dtype)

    if im2col:
        # One matmul with contraction K*C_in (MXU occupancy K x higher than per-tap).
        cols = jnp.concatenate(
            [window[:, j * dilation: j * dilation + tl] for j in range(ksize)],
            axis=0)                                                     # [K*C_in, TL]
        acc = jnp.dot(w_ref[...], cols, preferred_element_type=jnp.float32)
    else:
        # Large-C_in path: chain of per-tap dots into one f32 accumulator.
        acc = jnp.zeros(o_ref.shape, jnp.float32)
        for j in range(ksize):
            acc = acc + jnp.dot(w_ref[j],
                                window[:, j * dilation: j * dilation + tl],
                                preferred_element_type=jnp.float32)

    acc = acc + b_ref[...].astype(jnp.float32)                          # [C_out, TL]
    o_ref[...] = acc.astype(o_ref.dtype)

    # Save the last `pad` columns of this tile as the halo for the next tile.
    if pad > 0 and pad <= tl:
        carry_ref[...] = x_ref[:, tl - pad:]


def causal_conv1d(x, weight, bias, *, dilation=1, seq_tile=512, compute_dtype=None):
    """x: [B, C_in, L], weight: [C_out, C_in, K], bias: [C_out] -> [B, C_out, L]."""
    B, C_in, L = x.shape
    C_out, C_in_w, K = weight.shape
    assert C_in_w == C_in
    pad = (K - 1) * dilation

    # Pick a sequence tile: multiple of 128 (lane width) that divides L, capped at
    # seq_tile; fall back to the full sequence for short / unaligned L.
    if L <= seq_tile:
        TL = L
    else:
        TL = None
        for cand in (seq_tile, 512, 256, 128):
            if cand <= L and L % cand == 0 and cand % 128 == 0:
                TL = cand
                break
        if TL is None:
            TL = L  # TODO(synk): pad L up to a multiple of 128 for long unaligned sequences
    if pad >= TL:
        TL = L  # single tile per batch; halo is just the in-kernel zero carry
    nT = L // TL

    im2col = C_in < 128
    if im2col:
        # W_flat[o, j*C_in + i] = weight[o, i, j]
        w_arg = jnp.transpose(weight, (0, 2, 1)).reshape(C_out, K * C_in)
        w_spec = pl.BlockSpec((C_out, K * C_in), lambda b, it: (0, 0))
    else:
        w_arg = jnp.transpose(weight, (2, 0, 1))  # [K, C_out, C_in]
        w_spec = pl.BlockSpec((K, C_out, C_in), lambda b, it: (0, 0, 0))
    if compute_dtype is not None:
        w_arg = w_arg.astype(compute_dtype)

    b2 = bias.reshape(C_out, 1)

    kernel = functools.partial(
        _causal_conv1d_kernel,
        tl=TL, pad=pad, dilation=dilation, ksize=K,
        im2col=im2col, compute_dtype=compute_dtype)

    out = pl.pallas_call(
        kernel,
        out_shape=jax.ShapeDtypeStruct((B, C_out, L), x.dtype),
        grid=(B, nT),
        in_specs=[
            # Current sequence tile of x, NCL-native (L is the lane axis).
            pl.BlockSpec((None, C_in, TL), lambda b, it: (b, 0, it)),
            w_spec,                                          # full weights, VMEM-resident
            pl.BlockSpec((C_out, 1), lambda b, it: (0, 0)),  # bias column
        ],
        out_specs=pl.BlockSpec((None, C_out, TL), lambda b, it: (b, 0, it)),
        scratch_shapes=[
            pltpu.VMEM((C_in, max(pad, 1)), x.dtype),        # causal halo carry
        ],
        compiler_params=pltpu.CompilerParams(
            # batch tiles are independent (megacore); the L-tile axis carries the
            # halo scratch, so it must stay sequential.
            dimension_semantics=("parallel", "arbitrary"),
            vmem_limit_bytes=32 * 1024 * 1024,
        ),
    )(x, w_arg, b2)
    return out


def _reference(x, weight, bias, *, dilation):
    # Pure-JAX reference: causal conv via left-only padding.
    K = weight.shape[-1]
    pad = (K - 1) * dilation
    out = lax.conv_general_dilated(
        x, weight,
        window_strides=(1,),
        padding=[(pad, 0)],
        rhs_dilation=(dilation,),
        dimension_numbers=("NCH", "OIH", "NCH"),
    )
    return out + bias[None, :, None]


if __name__ == "__main__":
    # Shapes consistent with the module's forward: x [batch, channels, seq_len].
    B, C_in, C_out, L, K, DIL = 2, 4, 4, 16, 3, 2

    key = jax.random.PRNGKey(0)
    kx, kw, kb, kx2 = jax.random.split(key, 4)

    x = jax.random.normal(kx, (B, C_in, L), dtype=jnp.float32)

    # Deterministic init mimicking nn.Conv1d default: U(-1/sqrt(fan_in), 1/sqrt(fan_in))
    fan_in = C_in * K
    bound = 1.0 / (fan_in ** 0.5)
    weight = jax.random.uniform(kw, (C_out, C_in, K), jnp.float32, -bound, bound)
    bias = jax.random.uniform(kb, (C_out,), jnp.float32, -bound, bound)

    out = causal_conv1d(x, weight, bias, dilation=DIL)
    out = jax.block_until_ready(out)
    ref = _reference(x, weight, bias, dilation=DIL)
    assert out.shape == (B, C_out, L), out.shape
    assert jnp.allclose(out, ref, atol=1e-5, rtol=1e-5), "mismatch vs reference (single tile)"

    # Second small check: multi-tile sequence, exercises the cross-tile causal halo carry.
    L2 = 256
    x2 = jax.random.normal(kx2, (B, C_in, L2), dtype=jnp.float32)
    out2 = causal_conv1d(x2, weight, bias, dilation=DIL, seq_tile=128)
    out2 = jax.block_until_ready(out2)
    ref2 = _reference(x2, weight, bias, dilation=DIL)
    assert out2.shape == (B, C_out, L2), out2.shape
    assert jnp.allclose(out2, ref2, atol=1e-5, rtol=1e-5), "mismatch vs reference (tiled)"

    print("KERNEL_OK")
</pallas_src>

<mosaic_0001>
module attributes {stable_mosaic.version = 11 : i64} {
  func.func @_causal_conv1d_kernel(%arg0: i32, %arg1: i32, %arg2: memref<1x4x16xf32, #tpu.memory_space<vmem>>, %arg3: memref<4x12xf32, #tpu.memory_space<vmem>>, %arg4: memref<4x1xf32, #tpu.memory_space<vmem>>, %arg5: memref<1x4x16xf32, #tpu.memory_space<vmem>>, %arg6: memref<4x4xf32, #tpu.memory_space<vmem>>) attributes {dimension_semantics = [#tpu.dimension_semantics<parallel>, #tpu.dimension_semantics<arbitrary>], iteration_bounds = array<i64: 2, 1>, scalar_prefetch = 0 : i64, scratch_operands = 1 : i64, tpu.core_type = #tpu.core_type<tc>, window_params = [{transform_indices = @transform_0, window_bounds = array<i64: 1, 4, 16>}, {pipeline_mode = #tpu.pipeline_mode<synchronous>, transform_indices = @transform_1, window_bounds = array<i64: 4, 12>}, {pipeline_mode = #tpu.pipeline_mode<synchronous>, transform_indices = @transform_2, window_bounds = array<i64: 4, 1>}, {transform_indices = @transform_3, window_bounds = array<i64: 1, 4, 16>}]} {
    %c0_i32 = arith.constant 0 : i32
    %0 = arith.cmpi eq, %arg1, %c0_i32 : i32
    %1 = arith.extui %0 : i1 to i32
    %c0_i32_0 = arith.constant 0 : i32
    %2 = arith.cmpi ne, %1, %c0_i32_0 : i32
    scf.if %2 {
      %cst_16 = arith.constant 0.000000e+00 : f32
      %22 = vector.broadcast %cst_16 : f32 to vector<4x4xf32>
      %c0_17 = arith.constant 0 : index
      %c0_18 = arith.constant 0 : index
      %23 = vector.load %arg6[%c0_17, %c0_18] : memref<4x4xf32, #tpu.memory_space<vmem>>, vector<4x4xf32>
      tpu.vector_store %arg6[%c0_17, %c0_18], %22 {strides = array<i32>} : memref<4x4xf32, #tpu.memory_space<vmem>>, vector<4x4xf32>,
    } else {
    }
    %c0 = arith.constant 0 : index
    %c0_1 = arith.constant 0 : index
    %3 = vector.load %arg6[%c0, %c0_1] : memref<4x4xf32, #tpu.memory_space<vmem>>, vector<4x4xf32>
    %c0_2 = arith.constant 0 : index
    %c0_3 = arith.constant 0 : index
    %c0_4 = arith.constant 0 : index
    %4 = vector.load %arg2[%c0_2, %c0_3, %c0_4] : memref<1x4x16xf32, #tpu.memory_space<vmem>>, vector<1x4x16xf32>
    %5 = vector.shape_cast %4 : vector<1x4x16xf32> to vector<4x16xf32>
    %6 = tpu.concatenate %3, %5 in 1 : vector<4x4xf32>, vector<4x16xf32> -> vector<4x20xf32>
    %7 = vector.extract_strided_slice %6 {offsets = [0, 0], sizes = [4, 16], strides = [1, 1]} : vector<4x20xf32> to vector<4x16xf32>
    %8 = vector.extract_strided_slice %6 {offsets = [0, 2], sizes = [4, 16], strides = [1, 1]} : vector<4x20xf32> to vector<4x16xf32>
    %9 = vector.extract_strided_slice %6 {offsets = [0, 4], sizes = [4, 16], strides = [1, 1]} : vector<4x20xf32> to vector<4x16xf32>
    %10 = tpu.concatenate %7, %8, %9 in 0 : vector<4x16xf32>, vector<4x16xf32>, vector<4x16xf32> -> vector<12x16xf32>
    %c0_5 = arith.constant 0 : index
    %c0_6 = arith.constant 0 : index
    %11 = vector.load %arg3[%c0_5, %c0_6] : memref<4x12xf32, #tpu.memory_space<vmem>>, vector<4x12xf32>
    %cst = arith.constant dense<0.000000e+00> : vector<4x16xf32>
    %12 = tpu.matmul %11, %10, %cst {dimension_numbers = #tpu.dot_dimension_numbers<[1], [0], [0], [1], [0, 0, 1, 1], [], []>} : vector<4x12xf32>, vector<12x16xf32>, vector<4x16xf32> -> vector<4x16xf32>
    %c0_7 = arith.constant 0 : index
    %c0_8 = arith.constant 0 : index
    %13 = vector.load %arg4[%c0_7, %c0_8] : memref<4x1xf32, #tpu.memory_space<vmem>>, vector<4x1xf32>
    %14 = vector.broadcast %13 : vector<4x1xf32> to vector<4x16xf32>
    %15 = arith.addf %12, %14 : vector<4x16xf32>
    %c0_9 = arith.constant 0 : index
    %c0_10 = arith.constant 0 : index
    %c0_11 = arith.constant 0 : index
    %16 = vector.load %arg5[%c0_9, %c0_10, %c0_11] : memref<1x4x16xf32, #tpu.memory_space<vmem>>, vector<1x4x16xf32>
    %17 = vector.shape_cast %16 : vector<1x4x16xf32> to vector<4x16xf32>
    %18 = vector.shape_cast %15 : vector<4x16xf32> to vector<1x4x16xf32>
    tpu.vector_store %arg5[%c0_9, %c0_10, %c0_11], %18 {strides = array<i32>} : memref<1x4x16xf32, #tpu.memory_space<vmem>>, vector<1x4x16xf32>,
    %c0_12 = arith.constant 0 : index
    %c0_13 = arith.constant 0 : index
    %c12 = arith.constant 12 : index
    %19 = vector.load %arg2[%c0_12, %c0_13, %c12] : memref<1x4x16xf32, #tpu.memory_space<vmem>>, vector<1x4x4xf32>
    %20 = vector.shape_cast %19 : vector<1x4x4xf32> to vector<4x4xf32>
    %c0_14 = arith.constant 0 : index
    %c0_15 = arith.constant 0 : index
    %21 = vector.load %arg6[%c0_14, %c0_15] : memref<4x4xf32, #tpu.memory_space<vmem>>, vector<4x4xf32>
    tpu.vector_store %arg6[%c0_14, %c0_15], %20 {strides = array<i32>} : memref<4x4xf32, #tpu.memory_space<vmem>>, vector<4x4xf32>,
    return
  }
  func.func @transform_0(%arg0: i32, %arg1: i32) -> (i32, i32, i32) {
    %c0_i32 = arith.constant 0 : i32
    %c0_i32_0 = arith.constant 0 : i32
    return %arg0, %c0_i32, %arg1 : i32, i32, i32
  }
  func.func @transform_1(%arg0: i32, %arg1: i32) -> (i32, i32) {
    %c0_i32 = arith.constant 0 : i32
    %c0_i32_0 = arith.constant 0 : i32
    %c0_i32_1 = arith.constant 0 : i32
    return %c0_i32, %c0_i32_0 : i32, i32
  }
  func.func @transform_2(%arg0: i32, %arg1: i32) -> (i32, i32) {
    %c0_i32 = arith.constant 0 : i32
    %c0_i32_0 = arith.constant 0 : i32
    %c0_i32_1 = arith.constant 0 : i32
    return %c0_i32, %c0_i32_0 : i32, i32
  }
  func.func @transform_3(%arg0: i32, %arg1: i32) -> (i32, i32, i32) {
    %c0_i32 = arith.constant 0 : i32
    %c0_i32_0 = arith.constant 0 : i32
    return %arg0, %c0_i32, %arg1 : i32, i32, i32
  }
}

</mosaic_0001>

<bundles_post_ra>
// kernel: tpu_custom_call.1
= control target key start
LH: loop header
LB: loop body
LE: loop exit
PB: predicated region body
PF: predicated region fallthrough
CT: control target
= control target key end

     0   :  { %8 = vsyncpa [#allocation4], 0  ;;  %s800_s0 = inlined_call_operand.hbm [shape: f32[2,4,16], index: 0, kind: input, shape index: {}]   ;;  %s801_s1 = inlined_call_operand.vmem [shape: f32[4,12], index: 1, kind: input, shape index: {}]   ;;  %s802_s2 = inlined_call_operand.vmem [shape: f32[4,1], index: 2, kind: input, shape index: {}]   ;;  %s803_s3 = inlined_call_operand.hbm [shape: f32[2,4,16], index: 3, kind: output, shape index: {}]  }
   0x1   :  { %10 = vsyncpa [#allocation4 + $0x1], 0 }
   0x2   :  { %11 = vsyncpa [#allocation5], 0 }
   0x3   :  { %13 = vsyncpa [#allocation5 + $0x1], 0  ;;  %s648_s12 = smov 0   ;;  %s650_s13 = smov 0  }
   0x4   :  { %s652_s14 = smov 0   ;;  %s654_s15 = smov 0  }
   0x5   :  { %s656_s16 = smov 0   ;;  %s658_s17 = smov 0  }
   0x6 LB: > { %s413_s18 = sadd.s32 4294967295, %s617_s17   ;;  %s414_s19 = sadd.s32 4294967294, %s617_s17   ;;  %s617_s17 = sphi %s658_s17, %s19_s17   ;;  %s613_s16 = sphi %s656_s16, %s815_s16   ;;  %s609_s15 = sphi %s654_s15, %s814_s15   ;;  %s605_s14 = sphi %s652_s14, %s813_s14   ;;  %s601_s13 = sphi %s650_s13, %s812_s13   ;;  %s597_s12 = sphi %s648_s12, %s811_s12  }
   0x7   : > { %s31_s20 = sadd.s32 1, %s613_s16  ;;  %s40_s21 = sadd.s32 1, %s605_s14 }
   0x8   : > { %p33_p0 = scmp.ge.s32.totalorder %s31_s20, 2  ;;  %p47_p1 = scmp.ne.s32.totalorder %s605_s14, %s601_s13 }
   0x9   : > { %p48_p2 = scmp.eq.s32.totalorder %s617_s17, 0  ;;  %p53_p3 = scmp.ne.s32.totalorder %s601_s13, %s597_s12 }
   0xa   : > { %s817_s20 = smov (%p33_p0, %s31_s20), 0  ;;  %p54_p5 = scmp.eq.s32.totalorder %s413_s18, 0 }
   0xb   : > { %p689_p4 = por %p48_p2, %p47_p1  ;;  %s35_s23 = ssub.s32 %s613_s16, %s817_s20 }
   0xc   : > { %p121_p6 = scmp.eq.s32.totalorder %s413_s18, 1  ;;  %p38_p7 = scmp.eq.s32.totalorder %s35_s23, 0 }
   0xd   : > { %p695_p8 = por %p54_p5, %p53_p3  ;;  %p127_p10 = scmp.eq.s32.totalorder %s414_s19, 1 }
   0xe   : > { %p699_p9 = por %p121_p6, %p47_p1  ;;  %p450_p13 = scmp.lt.s32.totalorder %s617_s17, 2 }
   0xf   : > { %s704_s26 = scalar_select %p38_p7, %s605_s14, %s40_s21  }
  0x10   : > { %p706_p11 = por %p127_p10, %p53_p3  ;;  %s153_s28 = sand.u32 1, %s605_s14  }
  0x11   : > { %s417_s29 = sshll.u32 %s153_s28, 2  ;;  %s418_s30 = sshll.u32 %s613_s16, 6 }
  0x12   : > { %s807_s27 = scalar_select %p706_p11, 1, 0 }
  0x13   : > { %s163_s6 = scalar_lea.hbm %s800_s0, %s418_s30  ;;  %s157_s7 = scalar_lea.vmem [#allocation3], %s417_s29 }
  0x14   : > { %s165_s8 = sshll.u32 %s157_s7, 4  ;;  %p719_p0 = pnand %p450_p13, %p689_p4  ;;  %s166_s8 = int_to_ptr.vmem [resolvable:$true] %s165_s8 }
  0x15   : > { %p419_p1 = scmp.ge.s32.totalorder %s617_s17, 1  ;;  %p170_p2 = scmp.lt.s32.totalorder %s617_s17, 3 }
  0x16   : > { %s154_s10 = scalar_lea.sflag [#allocation4], %s153_s28  ;;  %p511_p3 = pneg %p719_p0 }
  0x17   : > { %s522_s11 = scalar_lea.vmem %s166_s8, 64  ;;  %s619_s18 = smov [#allocation3]  }
  0x18   : > { %p523_p5 = scmp.ne.s32.totalorder %s166_s8, %s522_s11  ;;  %s527_s19 = sshll.u32 %s619_s18, 4  ;;  %s528_s19 = int_to_ptr.vmem [resolvable:$false] %s527_s19 }
  0x19   : > { %s529_s21 = scalar_lea.vmem %s528_s19, 128  ;;  %p530_p10 = scmp.lt.s32.totalorder %s166_s8, %s528_s19 }
  0x1a   : > { %p525_p6 = pnand %p523_p5, %p511_p3  ;;  %p531_p12 = scmp.lt.s32.totalorder %s529_s21, %s522_s11 }
  0x1c   : > { %p526_p7 = pneg %p525_p6  ;;  %p532_p4 = por %p531_p12, %p530_p10 }
  0x1e   : > { %p533_p13 = pnand %p532_p4, %p526_p7 }
  0x20   : > { %536 = shalt.err (!%p533_p13)
}
  0x21   : > { %445 = dma.hbm_to_vmem [thread:$0]  (!%p719_p0), %s163_s6, 64, %s166_s8, %s154_s10  }
  0x22   : > { %p171_p11 = pnand %p419_p1, %p170_p2 }
  0x23   : > { %s734_s22 = sand.u32 (!%p171_p11), 1, %s601_s13  }
  0x24   : > { %174 = sbr.rel (%p171_p11) target bundleno = 486 (0x1e6), region = 32  ;;  %s420_s23 = sshll.u32 (!%p171_p11), %s734_s22, 2 }
  0x25   : > { %s177_s28 = scalar_lea.sflag (!%p171_p11), [#allocation4], %s734_s22  ;;  %s180_s29 = scalar_lea.vmem (!%p171_p11), [#allocation3], %s420_s23 }
  0x29   : > { %588 = dma.done.wait (%p695_p8), %s177_s28, 64  }
  0x2a   : > { %590 = vsyncadd (%p695_p8), %s177_s28, 4294967232  ;;  %vm207_vm0 = vcmask 27648   ;;  %v620_v0 = vmov 0.0   ;;  %v210_v1 = vld [vmem:[%s180_s29] sm:$0xf]  ;;  %s621_s30 = smov 4  }
  0x2b   : > { %208 = vst.msk [vmem:[#allocation2] sm:$0xf] %vm207_vm0, %v620_v0  ;;  %431 = vmatprep.subr.mxu0 %v620_v0  ;;  %212 = vrot.lane.b32.xlu0 %v210_v1, %s621_s30  ;;  %vm622_vm1 = vmmov 0   ;;  %v623_v2 = vmov 0   ;;  %vm215_vm2 = vcmask 31744   ;;  %s624_s4 = smov 124  }
  0x2c   : > { %435 = vmatprep.mubr.msk.f32.mxu0 %vm622_vm1, %v620_v0  ;;  %507 = vset.pattern.permute.xlu1 %v623_v2  ;;  %v311_v7 = vld [vmem:[%s180_s29] sm:$0xf]  ;;  %s625_s24 = smov 126   ;;  %v227_v8 = vld [vmem:[%s802_s2] sm:$0xf]  ;;  %s626_s7 = smov 116  }
  0x2d   : > { %508 = vset.pattern.permute.xlu0 %v623_v2  ;;  %vm224_vm3 = vcmask 1043456   ;;  %v226_v11 = vld [vmem:[%s801_s1] sm:$0xf]  ;;  %vm233_vm4 = vcmask 97280   ;;  %s425_s10 = sshll.u32 %s609_s15, 6  ;;  %s202_s11 = scalar_lea.vmem [#allocation6], %s420_s23 }
  0x2e   : > { %s333_s18 = sshll.u32 %s202_s11, 4  ;;  %vm309_vm5 = vcmask 125952   ;;  %s758_s28 = scalar_lea.hbm %s803_s3, %s425_s10  ;;  %s334_s18 = int_to_ptr.vmem [resolvable:$true] %s333_s18 }
  0x2f   : > { %s319_s29 = scalar_lea.sflag [#allocation5], %s734_s22  ;;  %s537_s30 = scalar_lea.vmem %s334_s18, 64 }
  0x30   : > { %p538_p8 = scmp.ne.s32.totalorder %s334_s18, %s537_s30  ;;  %s627_s15 = smov [#allocation6]  }
  0x31   : > { %s541_s23 = sshll.u32 %s627_s15, 4  ;;  %s542_s23 = int_to_ptr.vmem [resolvable:$false] %s541_s23 }
  0x32   : > { %v209_v3 = vld [vmem:[#allocation2] sm:$0xf]  ;;  %p539_p11 = pnand %p538_p8, %p699_p9  ;;  %p544_p0 = scmp.lt.s32.totalorder %s334_s18, %s542_s23 }
  0x34   : > { %p540_p12 = pneg %p539_p11 }
  0x9d   : > { %v213_v4 = vpop.permute.xlu0 %212 }
  0x9e   : > { %v216_v5 = vsel %vm215_vm2, %v209_v3, %v213_v4 }
  0x9f   : > { %222 = vrot.lane.b32.xlu0 %v216_v5, %s624_s4  ;;  %v218_v6 = vrot.slane %v216_v5, 4  ;;  %s543_s4 = scalar_lea.vmem %s542_s23, 128 }
  0xa0   : > { %p545_p1 = scmp.lt.s32.totalorder %s543_s4, %s537_s30 }
  0xa1   : > { %219 = vrot.lane.b32.xlu1 %v218_v6, %s625_s24 }
  0xa2   : > { %p546_p2 = por %p545_p1, %p544_p0 }
  0xa3   : > { %313 = vrot.lane.b32.xlu0 %v311_v7, %s626_s7 }
  0xa4   : > { %p547_p3 = pnand %p546_p2, %p540_p12 }
  0xa5   : > { %230 = vperm.xlu1 %507, %v227_v8  }
 0x111   : > { %v223_v9 = vpop.permute.xlu0 %222 }
 0x112   : > { %432 = vmatpush3.msk.msra.mxu0 %vm224_vm3, %v223_v9 }
 0x113   : > { %v220_v10 = vpop.permute.xlu1 %219  ;;  %433 = vmatprep.subr.mxu0 %v620_v0 }
 0x114   : > { %v225_v12 = vsel %vm224_vm3, %v216_v5, %v220_v10 }
 0x115   : > { %434 = vmatpush3.msra.mxu0 %v225_v12  ;;  %v314_v13 = vpop.permute.xlu0 %313 }
 0x116   : > { %436 = vmatmul.mubr.msk.f32.vlgmr.msra.gmra.mxu0 %vm233_vm4, %v226_v11  ;;  %317 = vst.msk [vmem:[#allocation2] sm:$0xf] %vm207_vm0, %v314_v13 }
 0x120   : > { %v231_v14 = vpop.permute.xlu1 %230 }
 0x1d6   : > { %v305_v15 = vpop.f32.mrf.mxu0 }
 0x1d7   : > { %v306_v16 = vadd.f32 %v305_v15, %v231_v14 }
 0x1d8   : > { %v437_v17 = vpop.f32.mrf.mxu0 }
 0x1d9   : > { %310 = vst.msk [vmem:[%s202_s11] sm:$0xf] %vm309_vm5, %v306_v16 }
 0x1da   : > { %550 = shalt.err (!%p547_p3)
}
 0x1db   : > { %s551_s24 = scalar_lea.hbm %s758_s28, 64  ;;  %s555_s6 = scalar_lea.hbm %s803_s3, 128 }
 0x1dc   : > { %p552_p5 = scmp.ne.s32.totalorder %s758_s28, %s551_s24  ;;  %p556_p10 = scmp.lt.s32.totalorder %s758_s28, %s803_s3 }
 0x1dd   : > { %p557_p4 = scmp.lt.s32.totalorder %s555_s6, %s551_s24 }
 0x1de   : > { %p553_p6 = pnand %p552_p5, %p699_p9 }
 0x1df   : > { %p558_p13 = por %p557_p4, %p556_p10 }
 0x1e0   : > { %p554_p7 = pneg %p553_p6 }
 0x1e2   : > { %p559_p8 = pnand %p558_p13, %p554_p7 }
 0x1e4   : > { %562 = shalt.err (!%p559_p8)
}
 0x1e5   : > { %440 = dma.vmem_to_hbm [thread:$0]  (%p699_p9), %s334_s18, 64, %s758_s28, %s319_s29  }
 0x1e6 PF: > { %s345_s9 = sand.u32 1, %s597_s12   ;;  %p809_p11 = scmp.ne.s32.totalorder %s807_s27, 0 }
 0x1e7   : > { %p810_p12 = scmp.ge.s32.totalorder %s617_s17, 2  ;;  %s346_s10 = scalar_lea.sflag [#allocation5], %s345_s9 }
 0x1e9   : > { %p447_p0 = pnand %p810_p12, %p809_p11 }
 0x1eb   : > { %p448_p1 = pneg %p447_p0 }
 0x1ed   : > { %592 = dma.done.wait (%p448_p1), %s346_s10, 64  }
 0x1ee   : > { %594 = vsyncadd (%p448_p1), %s346_s10, 4294967232  ;;  %s19_s17 = sadd.s32 1, %s617_s17   ;;  %s811_s12 = smov %s601_s13 }
 0x1ef   : > { %p16_p2 = scmp.ge.s32.totalorder %s19_s17, 4   ;;  %s812_s13 = smov %s605_s14 }
 0x1f0   : > { %s813_s14 = smov %s704_s26  ;;  %s814_s15 = smov %s613_s16 }
 0x1f1   : > { %s815_s16 = smov %s817_s20  ;;  %18 = sbr.rel (!%p16_p2) target bundleno = 6 (0x6), region = 81 }
 0x1f6   :  { %351 = vsyncpa [#allocation4], 1 }
 0x1f7   :  { %353 = vsyncpa [#allocation4 + $0x1], 1 }
 0x1f8   :  { %354 = vsyncpa [#allocation5], 1 }
 0x1f9   :  { %356 = vsyncpa [#allocation5 + $0x1], 1 }

</bundles_post_ra>
